<compile_context>
chip_gen: v7x
topology: tpu7x:2x2x1
jax: 0.10.0
libtpu: 0.0.40
codegen_flags: <defaults>
</compile_context>

<pallas_src>
import jax
import jax.numpy as jnp
from jax.experimental import pallas as pl
from jax.experimental.pallas import tpu as pltpu


def _round_up(x, m):
    return (x + m - 1) // m * m


def _make_downsample_kernel(c_in, use_mxu):
    def kernel(x_ref, w_ref, bias_ref, o_ref):
        # x_ref:    (8, C_in, T)   -- 8 = flattened 2x2x2 max-pool window
        # w_ref:    (C_out, C_in)  -- conv weight with BN scale folded in (f32)
        # bias_ref: (C_out, 1)     -- folded BN bias (f32)
        # o_ref:    (C_out, T)     -- lane-dense output rows
        x = x_ref[...]
        # MaxPool3d(kernel=2, stride=2): reduce over the leading window axis
        # -> 7 elementwise maxes over full lane-dense (C_in, T) planes (VPU).
        pooled = jnp.max(x, axis=0).astype(jnp.float32)          # (C_in, T)
        w = w_ref[...]                                           # (C_out, C_in)
        if use_mxu:
            # Large channel counts: 1x1x1 conv as an MXU matmul, N = T (lane dim).
            y = jnp.dot(w, pooled, preferred_element_type=jnp.float32)
        else:
            # Tiny contraction (e.g. 4->8): keep it on the VPU as C_in lane-dense
            # broadcast FMAs; the MXU would be ~idle and the op is mem-bound anyway.
            y = w[:, 0:1] * pooled[0:1, :]                       # (C_out, T)
            for c in range(1, c_in):
                y = y + w[:, c:c + 1] * pooled[c:c + 1, :]
        y = y + bias_ref[...]                                    # folded BN bias
        o_ref[...] = jnp.maximum(y, 0.0).astype(o_ref.dtype)     # ReLU
    return kernel


def _pick_row_tile(rows, c_in, c_out, itemsize,
                   vmem_budget_bytes=32 * 1024 * 1024):
    """Largest lane-multiple tile that fits a double-buffered VMEM budget,
    while keeping >= 2 grid steps (pipelining + v7x megacore)."""
    sub_in = 8 * _round_up(max(c_in, 1), 8)       # sublane-padded input plane rows
    sub_out = _round_up(max(c_out, 1), 8)         # sublane-padded output rows
    per_row = 2 * (sub_in + sub_out) * itemsize   # double-buffered bytes / lane col
    t = max(128, (vmem_budget_bytes // max(per_row, 1)) // 128 * 128)
    t = min(t, 4096)
    rows_128 = _round_up(rows, 128)
    if rows_128 > 128:
        t = min(t, max(128, (rows_128 // 2) // 128 * 128))
    else:
        t = 128
    return t


def downsample(x_ncdhw, conv_w, gamma, beta, run_mean, run_var, *,
               eps=1e-3, row_tile=None):
    N, C, D, H, W = x_ncdhw.shape
    Cout = conv_w.shape[0]
    Do, Ho, Wo = D // 2, H // 2, W // 2
    rows = N * Do * Ho * Wo

    # --- host glue (single transpose): NCDHW -> (8, C_in, rows), rows lane-dense ---
    x = x_ncdhw[:, :, :Do * 2, :Ho * 2, :Wo * 2]          # floor, like MaxPool3d
    x = x.reshape(N, C, Do, 2, Ho, 2, Wo, 2)
    x = jnp.transpose(x, (3, 5, 7, 1, 0, 2, 4, 6))        # (2,2,2, C, N,Do,Ho,Wo)
    x = x.reshape(8, C, rows)

    # --- fold BN (inference) into the conv weight / a per-channel bias ---
    inv_std = 1.0 / jnp.sqrt(run_var.astype(jnp.float32) + eps)
    scale = gamma.astype(jnp.float32) * inv_std                        # (Cout,)
    w = conv_w.reshape(Cout, C).astype(jnp.float32) * scale[:, None]   # (Cout, C)
    bias = (beta.astype(jnp.float32)
            - run_mean.astype(jnp.float32) * scale).reshape(Cout, 1)

    if row_tile is None:
        row_tile = _pick_row_tile(rows, C, Cout,
                                  jnp.dtype(x_ncdhw.dtype).itemsize)
    rows_padded = _round_up(rows, row_tile)
    if rows_padded != rows:
        # Pad instead of collapsing to a single un-pipelined block.
        x = jnp.pad(x, ((0, 0), (0, 0), (0, rows_padded - rows)))

    grid = (rows_padded // row_tile,)
    use_mxu = min(C, Cout) >= 16
    kernel = _make_downsample_kernel(C, use_mxu)

    out = pl.pallas_call(
        kernel,
        out_shape=jax.ShapeDtypeStruct((Cout, rows_padded), x_ncdhw.dtype),
        grid_spec=pltpu.PrefetchScalarGridSpec(
            num_scalar_prefetch=0,
            grid=grid,
            in_specs=[
                pl.BlockSpec((8, C, row_tile), lambda i: (0, 0, i)),
                pl.BlockSpec((Cout, C), lambda i: (0, 0)),
                pl.BlockSpec((Cout, 1), lambda i: (0, 0)),
            ],
            out_specs=pl.BlockSpec((Cout, row_tile), lambda i: (0, i)),
        ),
        compiler_params=pltpu.CompilerParams(
            dimension_semantics=("parallel",),
            vmem_limit_bytes=48 * 1024 * 1024,   # safe on v7x (64 MiB physical)
        ),
    )(x, w, bias)

    out = out[:, :rows].reshape(Cout, N, Do, Ho, Wo)
    return jnp.transpose(out, (1, 0, 2, 3, 4))            # back to NCDHW


def reference(x_ncdhw, conv_w, gamma, beta, run_mean, run_var, eps=1e-3):
    """Pure-JAX reference of the same forward semantics (eval-mode BN)."""
    N, C, D, H, W = x_ncdhw.shape
    Cout = conv_w.shape[0]
    Do, Ho, Wo = D // 2, H // 2, W // 2
    x = x_ncdhw[:, :, :Do * 2, :Ho * 2, :Wo * 2]
    x = x.reshape(N, C, Do, 2, Ho, 2, Wo, 2)
    pooled = x.max(axis=(3, 5, 7))                            # (N, C, Do, Ho, Wo)
    y = jnp.einsum('ncdhw,oc->nodhw', pooled, conv_w.reshape(Cout, C))
    scale = gamma / jnp.sqrt(run_var + eps)
    bias = beta - run_mean * scale
    y = y * scale[None, :, None, None, None] + bias[None, :, None, None, None]
    return jnp.maximum(y, 0.0)


if __name__ == "__main__":
    key = jax.random.PRNGKey(0)
    k_x, k_w, k_g, k_b, k_m, k_v = jax.random.split(key, 6)

    N, C_in, C_out = 2, 4, 8
    D, H, W = 8, 16, 16

    x = jax.random.normal(k_x, (N, C_in, D, H, W), dtype=jnp.float32)

    # Deterministic parameter init (Conv3d(4->8, kernel 1x1x1, bias=False) + BN)
    conv_w = jax.random.normal(k_w, (C_out, C_in, 1, 1, 1), dtype=jnp.float32) * 0.2
    gamma = 0.5 + jax.random.uniform(k_g, (C_out,), dtype=jnp.float32)
    beta = 0.1 * jax.random.normal(k_b, (C_out,), dtype=jnp.float32)
    run_mean = 0.1 * jax.random.normal(k_m, (C_out,), dtype=jnp.float32)
    run_var = 0.5 + jax.random.uniform(k_v, (C_out,), dtype=jnp.float32)

    out = downsample(x, conv_w, gamma, beta, run_mean, run_var)
    out = jax.block_until_ready(out)

    ref = reference(x, conv_w, gamma, beta, run_mean, run_var)
    assert out.shape == (N, C_out, D // 2, H // 2, W // 2), out.shape
    assert jnp.allclose(out, ref, atol=1e-4, rtol=1e-4), \
        float(jnp.max(jnp.abs(out - ref)))

    print("KERNEL_OK")
</pallas_src>

<mosaic_0001>
module attributes {stable_mosaic.version = 11 : i64} {
  func.func @kernel(%arg0: i32, %arg1: memref<8x4x256xf32, #tpu.memory_space<vmem>>, %arg2: memref<8x4xf32, #tpu.memory_space<vmem>>, %arg3: memref<8x1xf32, #tpu.memory_space<vmem>>, %arg4: memref<8x256xf32, #tpu.memory_space<vmem>>) attributes {dimension_semantics = [#tpu.dimension_semantics<parallel>], iteration_bounds = array<i64: 2>, scalar_prefetch = 0 : i64, scratch_operands = 0 : i64, tpu.core_type = #tpu.core_type<tc>, window_params = [{transform_indices = @transform_0, window_bounds = array<i64: 8, 4, 256>}, {pipeline_mode = #tpu.pipeline_mode<synchronous>, transform_indices = @transform_1, window_bounds = array<i64: 8, 4>}, {pipeline_mode = #tpu.pipeline_mode<synchronous>, transform_indices = @transform_2, window_bounds = array<i64: 8, 1>}, {transform_indices = @transform_3, window_bounds = array<i64: 8, 256>}]} {
    %c0 = arith.constant 0 : index
    %c0_0 = arith.constant 0 : index
    %c0_1 = arith.constant 0 : index
    %0 = vector.load %arg1[%c0, %c0_0, %c0_1] : memref<8x4x256xf32, #tpu.memory_space<vmem>>, vector<8x4x256xf32>
    %cst = arith.constant dense<0xFF800000> : vector<4x256xf32>
    %1 = vector.multi_reduction <maximumf>, %0, %cst [0] : vector<8x4x256xf32> to vector<4x256xf32>
    %c0_2 = arith.constant 0 : index
    %c0_3 = arith.constant 0 : index
    %2 = vector.load %arg2[%c0_2, %c0_3] : memref<8x4xf32, #tpu.memory_space<vmem>>, vector<8x4xf32>
    %3 = vector.extract_strided_slice %2 {offsets = [0, 0], sizes = [8, 1], strides = [1, 1]} : vector<8x4xf32> to vector<8x1xf32>
    %4 = vector.extract_strided_slice %1 {offsets = [0, 0], sizes = [1, 256], strides = [1, 1]} : vector<4x256xf32> to vector<1x256xf32>
    %5 = vector.broadcast %3 : vector<8x1xf32> to vector<8x256xf32>
    %6 = vector.broadcast %4 : vector<1x256xf32> to vector<8x256xf32>
    %7 = arith.mulf %5, %6 : vector<8x256xf32>
    %8 = vector.extract_strided_slice %2 {offsets = [0, 1], sizes = [8, 1], strides = [1, 1]} : vector<8x4xf32> to vector<8x1xf32>
    %9 = vector.extract_strided_slice %1 {offsets = [1, 0], sizes = [1, 256], strides = [1, 1]} : vector<4x256xf32> to vector<1x256xf32>
    %10 = vector.broadcast %8 : vector<8x1xf32> to vector<8x256xf32>
    %11 = vector.broadcast %9 : vector<1x256xf32> to vector<8x256xf32>
    %12 = arith.mulf %10, %11 : vector<8x256xf32>
    %13 = arith.addf %7, %12 : vector<8x256xf32>
    %14 = vector.extract_strided_slice %2 {offsets = [0, 2], sizes = [8, 1], strides = [1, 1]} : vector<8x4xf32> to vector<8x1xf32>
    %15 = vector.extract_strided_slice %1 {offsets = [2, 0], sizes = [1, 256], strides = [1, 1]} : vector<4x256xf32> to vector<1x256xf32>
    %16 = vector.broadcast %14 : vector<8x1xf32> to vector<8x256xf32>
    %17 = vector.broadcast %15 : vector<1x256xf32> to vector<8x256xf32>
    %18 = arith.mulf %16, %17 : vector<8x256xf32>
    %19 = arith.addf %13, %18 : vector<8x256xf32>
    %20 = vector.extract_strided_slice %2 {offsets = [0, 3], sizes = [8, 1], strides = [1, 1]} : vector<8x4xf32> to vector<8x1xf32>
    %21 = vector.extract_strided_slice %1 {offsets = [3, 0], sizes = [1, 256], strides = [1, 1]} : vector<4x256xf32> to vector<1x256xf32>
    %22 = vector.broadcast %20 : vector<8x1xf32> to vector<8x256xf32>
    %23 = vector.broadcast %21 : vector<1x256xf32> to vector<8x256xf32>
    %24 = arith.mulf %22, %23 : vector<8x256xf32>
    %25 = arith.addf %19, %24 : vector<8x256xf32>
    %c0_4 = arith.constant 0 : index
    %c0_5 = arith.constant 0 : index
    %26 = vector.load %arg3[%c0_4, %c0_5] : memref<8x1xf32, #tpu.memory_space<vmem>>, vector<8x1xf32>
    %27 = vector.broadcast %26 : vector<8x1xf32> to vector<8x256xf32>
    %28 = arith.addf %25, %27 : vector<8x256xf32>
    %cst_6 = arith.constant 0.000000e+00 : f32
    %29 = vector.broadcast %cst_6 : f32 to vector<8x256xf32>
    %30 = arith.maximumf %28, %29 : vector<8x256xf32>
    %c0_7 = arith.constant 0 : index
    %c0_8 = arith.constant 0 : index
    %31 = vector.load %arg4[%c0_7, %c0_8] : memref<8x256xf32, #tpu.memory_space<vmem>>, vector<8x256xf32>
    tpu.vector_store %arg4[%c0_7, %c0_8], %30 {strides = array<i32>} : memref<8x256xf32, #tpu.memory_space<vmem>>, vector<8x256xf32>,
    return
  }
  func.func @transform_0(%arg0: i32) -> (i32, i32, i32) {
    %c0_i32 = arith.constant 0 : i32
    %c0_i32_0 = arith.constant 0 : i32
    %c0_i32_1 = arith.constant 0 : i32
    return %c0_i32, %c0_i32_0, %arg0 : i32, i32, i32
  }
  func.func @transform_1(%arg0: i32) -> (i32, i32) {
    %c0_i32 = arith.constant 0 : i32
    %c0_i32_0 = arith.constant 0 : i32
    %c0_i32_1 = arith.constant 0 : i32
    return %c0_i32, %c0_i32_0 : i32, i32
  }
  func.func @transform_2(%arg0: i32) -> (i32, i32) {
    %c0_i32 = arith.constant 0 : i32
    %c0_i32_0 = arith.constant 0 : i32
    %c0_i32_1 = arith.constant 0 : i32
    return %c0_i32, %c0_i32_0 : i32, i32
  }
  func.func @transform_3(%arg0: i32) -> (i32, i32) {
    %c0_i32 = arith.constant 0 : i32
    %c0_i32_0 = arith.constant 0 : i32
    return %c0_i32, %arg0 : i32, i32
  }
}

</mosaic_0001>

<bundles_post_ra>
// kernel: tpu_custom_call.1
= control target key start
LH: loop header
LB: loop body
LE: loop exit
PB: predicated region body
PF: predicated region fallthrough
CT: control target
= control target key end

     0   :  { %8 = vsyncpa [#allocation3], 0  ;;  %s779_s0 = inlined_call_operand.hbm [shape: f32[8,4,512], index: 0, kind: input, shape index: {}]   ;;  %s780_s1 = inlined_call_operand.vmem [shape: f32[8,4], index: 1, kind: input, shape index: {}]   ;;  %s781_s2 = inlined_call_operand.vmem [shape: f32[8,1], index: 2, kind: input, shape index: {}]   ;;  %s782_s3 = inlined_call_operand.hbm [shape: f32[8,512], index: 3, kind: output, shape index: {}]  }
   0x1   :  { %10 = vsyncpa [#allocation3 + $0x1], 0 }
   0x2   :  { %11 = vsyncpa [#allocation4], 0 }
   0x3   :  { %13 = vsyncpa [#allocation4 + $0x1], 0  ;;  %s610_s12 = smov 0   ;;  %s612_s13 = smov 0  }
   0x4   :  { %s614_s14 = smov 0   ;;  %s616_s15 = smov 0  }
   0x5 LB: > { %s631_s16 = sadd.s32 4294967295, %s579_s15   ;;  %s408_s17 = sadd.s32 4294967294, %s579_s15   ;;  %s579_s15 = sphi %s616_s15, %s796_s15   ;;  %s575_s14 = sphi %s614_s14, %s795_s14   ;;  %s571_s13 = sphi %s612_s13, %s794_s13   ;;  %s567_s12 = sphi %s610_s12, %s793_s12  }
   0x6   : > { %s635_s18 = sadd.s32 1, %s579_s15   ;;  %s26_s19 = sadd.s32 1, %s575_s14 }
   0x7   : > { %s23_s20 = ssub.s32 %s579_s15, %s635_s18  ;;  %p33_p0 = scmp.ne.s32.totalorder %s575_s14, %s571_s13 }
   0x8   : > { %p24_p1 = scmp.eq.s32.totalorder %s23_s20, 0  ;;  %p34_p2 = scmp.eq.s32.totalorder %s579_s15, 0 }
   0x9   : > { %p39_p3 = scmp.ne.s32.totalorder %s571_s13, %s567_s12  ;;  %p40_p4 = scmp.eq.s32.totalorder %s631_s16, 0 }
   0xa   : > { %s647_s21 = scalar_select %p24_p1, %s575_s14, %s26_s19  }
   0xb   : > { %p649_p5 = por %p34_p2, %p33_p0  ;;  %p653_p6 = por %p40_p4, %p39_p3 }
   0xc   : > { %p105_p7 = scmp.eq.s32.totalorder %s631_s16, 1  ;;  %p111_p8 = scmp.eq.s32.totalorder %s408_s17, 1 }
   0xd   : > { %p436_p10 = scmp.lt.s32.totalorder %s579_s15, 2  ;;  %s137_s26 = sand.u32 1, %s575_s14  }
   0xe   : > { %p660_p11 = por %p105_p7, %p33_p0  ;;  %p664_p12 = por %p111_p8, %p39_p3 }
   0xf   : > { %s422_s27 = sshll.u32 %s579_s15, 7  ;;  %s411_s28 = sshll.u32 %s137_s26, 6 }
  0x10   : > { %s786_s24 = scalar_select %p660_p11, 1, 0 }
  0x11   : > { %s787_s25 = scalar_select %p664_p12, 1, 0 }
  0x12   : > { %s673_s4 = scalar_lea.hbm %s779_s0, %s422_s27  ;;  %s141_s5 = scalar_lea.vmem [#allocation2], %s411_s28 }
  0x13   : > { %s148_s6 = sshll.u32 %s141_s5, 4  ;;  %p677_p13 = pnand %p436_p10, %p649_p5  ;;  %s681_s6 = int_to_ptr.vmem [resolvable:$true] %s148_s6 }
  0x14   : > { %s684_s8 = scalar_lea.sflag [#allocation3], %s137_s26  ;;  %s483_s9 = scalar_lea.hbm %s673_s4, 1024 }
  0x15   : > { %p484_p1 = scmp.ne.s32.totalorder %s673_s4, %s483_s9  ;;  %p485_p2 = pneg %p677_p13 }
  0x16   : > { %s488_s17 = scalar_lea.hbm %s779_s0, 2048  ;;  %p489_p5 = scmp.lt.u32.totalorder %s673_s4, %s779_s0 }
  0x17   : > { %p486_p3 = pnand %p485_p2, %p484_p1  ;;  %p490_p7 = scmp.lt.u32.totalorder %s488_s17, %s483_s9 }
  0x18   : > { %p492_p10 = scmp.lt.u32.totalorder %s483_s9, %s673_s4 }
  0x19   : > { %p487_p4 = pneg %p486_p3  ;;  %p491_p8 = por %p490_p7, %p489_p5 }
  0x1b   : > { %p493_p9 = por %p492_p10, %p491_p8 }
  0x1d   : > { %p494_p0 = pnand %p493_p9, %p487_p4 }
  0x1f   : > { %497 = shalt.err (!%p494_p0)
}
  0x20   : > { %s498_s22 = scalar_lea.vmem %s681_s6, 1024  ;;  %s581_s26 = smov [#allocation2]  }
  0x21   : > { %p499_p1 = scmp.ne.s32.totalorder %s681_s6, %s498_s22  ;;  %s503_s27 = sshll.u32 %s581_s26, 4  ;;  %s504_s27 = int_to_ptr.vmem [resolvable:$false] %s503_s27 }
  0x22   : > { %s505_s28 = scalar_lea.vmem %s504_s27, 2048  ;;  %p506_p11 = scmp.lt.s32.totalorder %s681_s6, %s504_s27 }
  0x23   : > { %p501_p3 = pnand %p499_p1, %p485_p2  ;;  %p507_p5 = scmp.lt.s32.totalorder %s505_s28, %s498_s22 }
  0x25   : > { %p502_p12 = pneg %p501_p3  ;;  %p508_p7 = por %p507_p5, %p506_p11 }
  0x27   : > { %p509_p8 = pnand %p508_p7, %p502_p12 }
  0x29   : > { %512 = shalt.err (!%p509_p8)
}
  0x2a   : > { %s582_s29 = smov 256   ;;  %s583_s30 = smov 128  }
  0x2b   : > { %s584_s5 = smov 8   ;;  %p156_p9 = scmp.lt.s32.totalorder %s579_s15, 3 }
  0x2c   : > { %431 = dma.hbm_to_vmem [thread:$0]  (!%p677_p13), %s673_s4, 1024, %s681_s6, %s684_s8, %s582_s29, %s583_s30, %s584_s5  }
  0x2d   : > { %p789_p0 = scmp.ge.s32.totalorder %s579_s15, 1 }
  0x2f   : > { %p157_p2 = pnand %p789_p0, %p156_p9 }
  0x30   : > { %s716_s9 = sand.u32 (!%p157_p2), 1, %s571_s13  }
  0x31   : > { %160 = sbr.rel (%p157_p2) target bundleno = 218 (0xda), region = 32  ;;  %s415_s10 = sshll.u32 (!%p157_p2), %s716_s9, 6 }
  0x32   : > { %s163_s11 = scalar_lea.sflag (!%p157_p2), [#allocation3], %s716_s9  ;;  %s166_s17 = scalar_lea.vmem (!%p157_p2), [#allocation2], %s415_s10 }
  0x38   : > { %558 = dma.done.wait (%p653_p6), %s163_s11, 1024  }
  0x39   : > { %560 = vsyncadd (%p653_p6), %s163_s11, 4294966272  ;;  %v585_v0 = vmov 0   ;;  %v586_v1 = vmov 2   ;;  %v206_v2 = vld [vmem:[%s780_s1] sm:$0xff]  ;;  %v587_v3 = vmov 1   ;;  %v588_v4 = vmov 3  }
  0x3a   : > { %477 = vset.pattern.permute.xlu0 %v585_v0  ;;  %479 = vset.pattern.permute.xlu1 %v586_v1  ;;  %v311_v5 = vld [vmem:[%s781_s2] sm:$0xff]  ;;  %v192_v7 = vld [vmem:[%s166_s17 + $0x8] sm:$0xff]  ;;  %v193_v8 = vld [vmem:[%s166_s17 + $0x10] sm:$0xff]  ;;  %v213_v14 = vlaneseq  ;;  %s416_s23 = sshll.u32 %s716_s9, 4  ;;  %s423_s19 = sshll.u32 %s631_s16, 8 }
  0x3b   : > { %209 = vperm.xlu0 %477, %v206_v2   ;;  %260 = vperm.xlu1 %479, %v206_v2   ;;  %v191_v6 = vld [vmem:[%s166_s17] sm:$0xff]  ;;  %v194_v9 = vld [vmem:[%s166_s17 + $0x18] sm:$0xff]  ;;  %v196_v11 = vld [vmem:[%s166_s17 + $0x28] sm:$0xff]  ;;  %s188_s20 = scalar_lea.vmem [#allocation5], %s416_s23  ;;  %s735_s28 = scalar_lea.hbm %s782_s3, %s423_s19 }
  0x3c   : > { %v195_v10 = vld [vmem:[%s166_s17 + $0x20] sm:$0xff]  ;;  %v197_v12 = vld [vmem:[%s166_s17 + $0x30] sm:$0xff]  ;;  %v198_v13 = vld [vmem:[%s166_s17 + $0x38] sm:$0xff]  ;;  %v200_v16 = vmax.f32 %v192_v7, %v196_v11  ;;  %v214_v19 = vshrl.u32 %v213_v14, 7  ;;  %s338_s22 = sshll.u32 %s188_s20, 4  ;;  %s324_s29 = scalar_lea.sflag [#allocation4], %s716_s9  ;;  %s737_s22 = int_to_ptr.vmem [resolvable:$true] %s338_s22 }
  0x3d   : > { %v199_v15 = vmax.f32 %v191_v6, %v195_v10  ;;  %v201_v17 = vmax.f32 %v193_v8, %v197_v12  ;;  %v202_v18 = vmax.f32 %v194_v9, %v198_v13  ;;  %s513_s16 = scalar_lea.vmem %s737_s22, 256  ;;  %p790_p11 = scmp.ne.s32.totalorder %s786_s24, 0 }
  0x3e   : > { %v215_v22 = vsub.s32 0, %v214_v19  ;;  %v219_v23 = vsub.s32 4, %v214_v19  ;;  %v239_v25 = vsub.s32 1, %v214_v19  ;;  %v243_v26 = vsub.s32 5, %v214_v19  ;;  %p514_p6 = scmp.ne.s32.totalorder %s737_s22, %s513_s16  ;;  %s589_s30 = smov [#allocation5]  }
  0x3f   : > { %478 = vset.pattern.permute.xlu0 %v587_v3  ;;  %480 = vset.pattern.permute.xlu1 %v588_v4  ;;  %v203_v20 = vmax.f32 %v199_v15, %v200_v16  ;;  %v204_v21 = vmax.f32 %v201_v17, %v202_v18  ;;  %v265_v27 = vsub.s32 2, %v214_v19  ;;  %v269_v28 = vsub.s32 6, %v214_v19  ;;  %s517_s5 = sshll.u32 %s589_s30, 4  ;;  %s518_s5 = int_to_ptr.vmem [resolvable:$false] %s517_s5 }
  0x40   : > { %234 = vperm.xlu0 %478, %v206_v2   ;;  %286 = vperm.xlu1 %480, %v206_v2   ;;  %v291_v29 = vsub.s32 3, %v214_v19  ;;  %v295_v30 = vsub.s32 7, %v214_v19  ;;  %p515_p12 = pnand %p514_p6, %p790_p11  ;;  %s519_s10 = scalar_lea.vmem %s518_s5, 512 }
  0x41   : > { %v205_v24 = vmax.f32 %v203_v20, %v204_v21  ;;  %p520_p4 = scmp.lt.s32.totalorder %s737_s22, %s518_s5  ;;  %p521_p10 = scmp.lt.s32.totalorder %s519_s10, %s513_s16 }
  0x42   : > { %p516_p13 = pneg %p515_p12 }
  0x43   : > { %v216_v31 = vrot.slane %v205_v24, %v215_v22  ;;  %v220_v32 = vrot.slane %v205_v24, %v219_v23  ;;  %v240_v33 = vrot.slane %v205_v24, %v239_v25  ;;  %v244_v34 = vrot.slane %v205_v24, %v243_v26  ;;  %p522_p1 = por %p521_p10, %p520_p4 }
  0x44   : > { %481 = vset.pattern.permute.xlu1 %v585_v0  ;;  %482 = vset.pattern.permute.xlu0 %v585_v0  ;;  %v266_v35 = vrot.slane %v205_v24, %v265_v27  ;;  %v270_v36 = vrot.slane %v205_v24, %v269_v28  ;;  %v292_v39 = vrot.slane %v205_v24, %v291_v29 }
  0x45   : > { %314 = vperm.xlu1 %481, %v311_v5   ;;  %v296_v40 = vrot.slane %v205_v24, %v295_v30  ;;  %v226_v41 = vrot.slane %v216_v31, %v215_v22  ;;  %v230_v42 = vrot.slane %v220_v32, %v215_v22  ;;  %v250_v43 = vrot.slane %v240_v33, %v239_v25  ;;  %p523_p3 = pnand %p522_p1, %p516_p13 }
  0x46   : > { %v254_v44 = vrot.slane %v244_v34, %v239_v25  ;;  %v276_v45 = vrot.slane %v266_v35, %v265_v27  ;;  %v280_v46 = vrot.slane %v270_v36, %v265_v27  ;;  %v302_v47 = vrot.slane %v292_v39, %v291_v29 }
  0x47   : > { %v306_v48 = vrot.slane %v296_v40, %v291_v29 }
  0xba   : > { %v210_v37 = vpop.permute.xlu0 %209  ;;  %v261_v38 = vpop.permute.xlu1 %260 }
  0xbb   : > { %v231_v51 = vmul.f32 %v226_v41, %v210_v37  ;;  %v232_v52 = vmul.f32 %v230_v42, %v210_v37  ;;  %v281_v55 = vmul.f32 %v276_v45, %v261_v38  ;;  %v282_v56 = vmul.f32 %v280_v46, %v261_v38 }
  0xbf   : > { %v235_v49 = vpop.permute.xlu0 %234  ;;  %v287_v50 = vpop.permute.xlu1 %286 }
  0xc0   : > { %v255_v53 = vmul.f32 %v250_v43, %v235_v49  ;;  %v256_v54 = vmul.f32 %v254_v44, %v235_v49  ;;  %v307_v59 = vmul.f32 %v302_v47, %v287_v50  ;;  %v308_v60 = vmul.f32 %v306_v48, %v287_v50 }
  0xc2   : > { %v257_v57 = vadd.f32 %v255_v53, %v231_v51  ;;  %v258_v58 = vadd.f32 %v256_v54, %v232_v52 }
  0xc4   : > { %v283_v61 = vadd.f32 %v281_v55, %v257_v57  ;;  %v284_v62 = vadd.f32 %v282_v56, %v258_v58  ;;  %v315_v63 = vpop.permute.xlu1 %314 }
  0xc6   : > { %v309_v0 = vadd.f32 %v307_v59, %v283_v61  ;;  %v310_v1 = vadd.f32 %v308_v60, %v284_v62 }
  0xc8   : > { %v317_v2 = vadd.f32 %v315_v63, %v309_v0  ;;  %v318_v3 = vadd.f32 %v315_v63, %v310_v1 }
  0xca   : > { %v319_v4 = vmax.f32 %v317_v2, 0.0  ;;  %v320_v5 = vmax.f32 %v318_v3, 0.0 }
  0xcc   : > { %321 = vst [vmem:[%s188_s20] sm:$0xff] %v319_v4  ;;  %322 = vst [vmem:[%s188_s20 + $0x8] sm:$0xff] %v320_v5 }
  0xcd   : > { %526 = shalt.err (!%p523_p3)
}
  0xce   : > { %s527_s9 = scalar_lea.hbm %s735_s28, 256  ;;  %s531_s4 = scalar_lea.hbm %s782_s3, 512 }
  0xcf   : > { %p528_p5 = scmp.ne.s32.totalorder %s735_s28, %s527_s9  ;;  %p532_p9 = scmp.lt.u32.totalorder %s735_s28, %s782_s3 }
  0xd0   : > { %p533_p0 = scmp.lt.u32.totalorder %s531_s4, %s527_s9  ;;  %p535_p6 = scmp.lt.u32.totalorder %s527_s9, %s735_s28 }
  0xd1   : > { %p529_p7 = pnand %p528_p5, %p790_p11 }
  0xd2   : > { %p534_p2 = por %p533_p0, %p532_p9 }
  0xd3   : > { %p530_p8 = pneg %p529_p7 }
  0xd4   : > { %p536_p12 = por %p535_p6, %p534_p2 }
  0xd6   : > { %p537_p13 = pnand %p536_p12, %p530_p8 }
  0xd8   : > { %540 = shalt.err (!%p537_p13)
}
  0xd9   : > { %426 = dma.vmem_to_hbm [thread:$0]  (%p790_p11), %s737_s22, 256, %s735_s28, %s324_s29  }
  0xda PF: > { %s350_s8 = sand.u32 1, %s567_s12   ;;  %p791_p4 = scmp.ne.s32.totalorder %s787_s25, 0 }
  0xdb   : > { %p792_p10 = scmp.ge.s32.totalorder %s579_s15, 2  ;;  %s351_s23 = scalar_lea.sflag [#allocation4], %s350_s8 }
  0xdd   : > { %p433_p1 = pnand %p792_p10, %p791_p4 }
  0xdf   : > { %562 = dma.done.wait (!%p433_p1), %s351_s23, 256  }
  0xe0   : > { %564 = vsyncadd (!%p433_p1), %s351_s23, 4294967040  ;;  %p16_p3 = scmp.ge.s32.totalorder %s635_s18, 4   ;;  %s793_s12 = smov %s571_s13 }
  0xe1   : > { %s794_s13 = smov %s575_s14  ;;  %s795_s14 = smov %s647_s21 }
  0xe2   : > { %s796_s15 = smov %s635_s18  ;;  %18 = sbr.rel (!%p16_p3) target bundleno = 5 (0x5), region = 77 }
  0xe9   :  { %356 = vsyncpa [#allocation3], 1 }
  0xea   :  { %358 = vsyncpa [#allocation3 + $0x1], 1 }
  0xeb   :  { %359 = vsyncpa [#allocation4], 1 }
  0xec   :  { %361 = vsyncpa [#allocation4 + $0x1], 1 }

</bundles_post_ra>
